<compile_context>
chip_gen: v5e
topology: v5e:2x2
jax: 0.10.0
libtpu: 0.0.40
codegen_flags: <defaults>
</compile_context>

<pallas_src>
import functools

import jax
import jax.numpy as jnp
from jax.experimental import pallas as pl
from jax.experimental.pallas import tpu as pltpu


def _round_up(n, m):
    return (n + m - 1) // m * m


def _sga_kernel(x_ref, w_ref, b_ref, o_ref, tap_ref, *, c_pad, nbp, off, shifts):
    """Fused SpatialGroupAttention forward for one (batch, row-band) block.

    x_ref   : (1, 1, Cp, slab)  bf16 flat band slab (band rows + 2-row halo + lane guard)
    w_ref   : (2*Cp, T*Cp)      bf16 stacked per-shift weights   [mask ; proc]
    b_ref   : (2*Cp, 1)         f32  stacked bias                [mask ; proc]
    o_ref   : (1, Cp, NBp)      f32  output band (lane count padded to a 128 multiple)
    tap_ref : (T*Cp, NBp)       bf16 scratch with the T distinct shifted input views
    """
    # Materialise each distinct tap shift exactly once (shared by mask & process branches).
    # All offsets are static Python ints.
    for t, s in enumerate(shifts):
        tap_ref[t * c_pad:(t + 1) * c_pad, :] = x_ref[0, 0, :, pl.ds(off + s, nbp)]

    # Single deep-contraction MXU matmul: (2*Cp, T*Cp) @ (T*Cp, NBp) -> f32.
    res = jnp.dot(w_ref[...], tap_ref[...], preferred_element_type=jnp.float32)
    res = res + b_ref[...]

    mask = pl.reciprocal(1.0 + jnp.exp(-res[:c_pad, :]), approx=True)   # sigmoid via EUP
    proc = jnp.maximum(res[c_pad:, :], 0.0)                             # ReLU
    o_ref[0] = (proc * mask).astype(o_ref.dtype)


def spatial_group_attention_forward(x, params, n_groups=4, band_rows=None):
    """Pallas forward of SpatialGroupAttention for an NCHW float32 input."""
    B, C, H, W = x.shape
    n_filters = 4
    cg = C // n_groups
    c_pad = _round_up(C, 16)          # bf16 sublane packing
    wp = W + 4                        # halo of 2 per side covers every kernel's padding
    hp = H + 4
    n_flat = hp * wp

    # ---- row-band tiling -------------------------------------------------------------
    if band_rows is None:
        divs = [d for d in range(1, H + 1) if H % d == 0 and d * wp <= 4096]
        band_rows = max(divs) if divs else 1
        if B == 1 and band_rows == H and H % 2 == 0:
            band_rows = H // 2            # give v7x's two TensorCores >= 2 parallel steps
    assert H % band_rows == 0, "band_rows must divide H"
    n_bands = H // band_rows
    band_nb = band_rows * wp                          # valid output lanes per band
    band_nb_pad = _round_up(band_nb, 128)             # lane-dense, unmasked stores
    slab = 4 * wp + band_nb_pad                       # band + 2-row halo + lane guard
    off = 2 * wp                                      # first output pixel inside a slab

    # ---- input: channel pad, spatial halo pad, flatten, overlapping band slabs --------
    # TODO(synk): the halo pad / slab stacking could be moved into the kernel via a manual
    # DMA from unpadded HBM into a zeroed VMEM scratch to save one HBM round-trip.
    xb16 = x.astype(jnp.bfloat16)
    xp = jnp.pad(xb16, ((0, 0), (0, c_pad - C), (2, 2), (2, 2)))
    xf = xp.reshape(B, c_pad, n_flat)
    guard = band_nb_pad - band_nb
    xf = jnp.pad(xf, ((0, 0), (0, 0), (0, guard)))
    xb = jnp.stack(
        [xf[:, :, t * band_nb:t * band_nb + slab] for t in range(n_bands)], axis=1
    )                                                  # (B, n_bands, Cp, slab)

    f32 = jnp.float32

    # ---- mask branch fold: sigmoid(Wm @ cat_g(conv_g(x)) + bm) = sigmoid(sum_s V_s x_s + b)
    mk_w = params["mk_w"].reshape(C, n_filters, cg).astype(f32)
    b_mask = params["mk_b"].reshape(C, 1).astype(f32)
    filt = [
        (params["f1_w"].reshape(cg, C, 1, 1), params["f1_b"], 0, 0),   # 1x1
        (params["f2_w"].reshape(cg, C, 1, 5), params["f2_b"], 0, 2),   # 1x5
        (params["f3_w"].reshape(cg, C, 5, 1), params["f3_b"], 2, 0),   # 5x1
        (params["f4_w"].reshape(cg, C, 3, 3), params["f4_b"], 1, 1),   # 3x3
    ]
    mask_taps = {}
    for g, (w_g, b_g, ph, pw_) in enumerate(filt):
        wm_g = mk_w[:, g, :]                                   # (C, cg)
        b_mask = b_mask + wm_g @ b_g.reshape(cg, 1).astype(f32)
        kh, kw = w_g.shape[2], w_g.shape[3]
        for ky in range(kh):
            for kx in range(kw):
                s = (ky - ph) * wp + (kx - pw_)
                mask_taps[s] = mask_taps.get(s, 0.0) + wm_g @ w_g[:, :, ky, kx].astype(f32)

    # ---- process branch fold: ReLU(pww @ dw3x3(x) + pwb) = ReLU(sum_k W_k x_k + b_p) ----
    d = params["dw_w"].reshape(C, 9).astype(f32)               # per-channel depthwise taps
    pww = params["pw_w"].reshape(C, C).astype(f32)
    b_proc = pww @ params["dw_b"].reshape(C, 1).astype(f32) + params["pw_b"].reshape(C, 1).astype(f32)
    proc_taps = {}
    for k in range(9):
        dy, dx = k // 3 - 1, k % 3 - 1
        s = dy * wp + dx
        proc_taps[s] = proc_taps.get(s, 0.0) + pww * d[:, k][None, :]   # column scaling

    shifts = tuple(sorted(set(mask_taps) | set(proc_taps)))
    t_taps = len(shifts)

    zero = jnp.zeros((C, C), f32)
    cols = []
    for s in shifts:
        blk = jnp.zeros((2 * c_pad, c_pad), f32)
        blk = blk.at[:C, :C].set(mask_taps.get(s, zero))
        blk = blk.at[c_pad:c_pad + C, :C].set(proc_taps.get(s, zero))
        cols.append(blk)
    wbig = jnp.concatenate(cols, axis=1).astype(jnp.bfloat16)          # (2*Cp, T*Cp)
    bias = jnp.zeros((2 * c_pad, 1), f32)
    bias = bias.at[:C].set(b_mask).at[c_pad:c_pad + C].set(b_proc)     # (2*Cp, 1)

    kernel = functools.partial(_sga_kernel, c_pad=c_pad, nbp=band_nb_pad, off=off,
                               shifts=shifts)

    # VMEM budget: double-buffered x/out blocks + weights + tap scratch, with headroom.
    est = (2 * c_pad * slab * 2                       # x slab (bf16), 2 buffers
           + 2 * (2 * c_pad) * (t_taps * c_pad) * 2   # stacked weights (bf16), 2 buffers
           + 2 * c_pad * band_nb_pad * 4              # output band (f32), 2 buffers
           + t_taps * c_pad * band_nb_pad * 2)        # tap scratch (bf16)
    vmem_limit = int(min(max(4 * est, 16 << 20), 48 << 20))

    out = pl.pallas_call(
        kernel,
        out_shape=jax.ShapeDtypeStruct((B, c_pad, n_bands * band_nb_pad), jnp.float32),
        grid_spec=pltpu.PrefetchScalarGridSpec(
            num_scalar_prefetch=0,
            grid=(B, n_bands),
            in_specs=[
                pl.BlockSpec((1, 1, c_pad, slab), lambda b, t: (b, t, 0, 0)),    # x slabs
                pl.BlockSpec((2 * c_pad, t_taps * c_pad), lambda b, t: (0, 0)),  # weights
                pl.BlockSpec((2 * c_pad, 1), lambda b, t: (0, 0)),               # bias
            ],
            out_specs=pl.BlockSpec((1, c_pad, band_nb_pad), lambda b, t: (b, 0, t)),
            scratch_shapes=[pltpu.VMEM((t_taps * c_pad, band_nb_pad), jnp.bfloat16)],
        ),
        compiler_params=pltpu.CompilerParams(
            dimension_semantics=("parallel", "parallel"),
            vmem_limit_bytes=vmem_limit,
        ),
    )(xb, wbig, bias)

    # Crop lane padding, channel padding and the per-row halo columns.
    out = out.reshape(B, c_pad, n_bands, band_nb_pad)[:, :C, :, :band_nb]
    out = out.reshape(B, C, H, wp)[:, :, :, 2:2 + W]
    return out


# --------------------------------- pure-JAX reference ---------------------------------
def _conv2d_ref(x, w, b, pad_h, pad_w):
    B, _, H, W = x.shape
    cout, _, kh, kw = w.shape
    xp = jnp.pad(x, ((0, 0), (0, 0), (pad_h, pad_h), (pad_w, pad_w)))
    out = jnp.zeros((B, cout, H, W), jnp.float32) + b[None, :, None, None]
    for ky in range(kh):
        for kx in range(kw):
            out = out + jnp.einsum("oi,bihw->bohw", w[:, :, ky, kx],
                                   xp[:, :, ky:ky + H, kx:kx + W])
    return out


def _depthwise3x3_ref(x, w, b):
    B, C, H, W = x.shape
    xp = jnp.pad(x, ((0, 0), (0, 0), (1, 1), (1, 1)))
    out = jnp.zeros((B, C, H, W), jnp.float32) + b[None, :, None, None]
    for ky in range(3):
        for kx in range(3):
            wk = w[:, 0, ky, kx][None, :, None, None]
            out = out + wk * xp[:, :, ky:ky + H, kx:kx + W]
    return out


def sga_reference(x, p):
    m1 = _conv2d_ref(x, p["f1_w"], p["f1_b"], 0, 0)
    m2 = _conv2d_ref(x, p["f2_w"], p["f2_b"], 0, 2)
    m3 = _conv2d_ref(x, p["f3_w"], p["f3_b"], 2, 0)
    m4 = _conv2d_ref(x, p["f4_w"], p["f4_b"], 1, 1)
    m = jnp.concatenate([m1, m2, m3, m4], axis=1)
    h = _depthwise3x3_ref(x, p["dw_w"], p["dw_b"])
    h = _conv2d_ref(h, p["pw_w"], p["pw_b"], 0, 0)
    h = jnp.maximum(h, 0.0)
    mk = _conv2d_ref(m, p["mk_w"], p["mk_b"], 0, 0)
    mk = 1.0 / (1.0 + jnp.exp(-mk))
    return h * mk


if __name__ == "__main__":
    B, C, H, W = 2, 4, 16, 16
    G = 4
    cg = C // G

    key = jax.random.PRNGKey(0)
    ks = jax.random.split(key, 15)

    def nrm(k, shape, scale=0.25):
        return scale * jax.random.normal(k, shape, dtype=jnp.float32)

    params = {
        "dw_w": nrm(ks[0], (C, 1, 3, 3)), "dw_b": nrm(ks[1], (C,)),
        "pw_w": nrm(ks[2], (C, C, 1, 1)), "pw_b": nrm(ks[3], (C,)),
        "f1_w": nrm(ks[4], (cg, C, 1, 1)), "f1_b": nrm(ks[5], (cg,)),
        "f2_w": nrm(ks[6], (cg, C, 1, 5)), "f2_b": nrm(ks[7], (cg,)),
        "f3_w": nrm(ks[8], (cg, C, 5, 1)), "f3_b": nrm(ks[9], (cg,)),
        "f4_w": nrm(ks[10], (cg, C, 3, 3)), "f4_b": nrm(ks[11], (cg,)),
        "mk_w": nrm(ks[12], (C, 4 * cg, 1, 1)), "mk_b": nrm(ks[13], (C,)),
    }
    x = jax.random.normal(ks[14], (B, C, H, W), dtype=jnp.float32)

    # band_rows=8 -> 2 row-bands per batch element: exercises the banded grid path.
    fwd = jax.jit(functools.partial(spatial_group_attention_forward,
                                    n_groups=G, band_rows=8))
    y = jax.block_until_ready(fwd(x, params))

    y_ref = jax.block_until_ready(sga_reference(x, params))
    assert y.shape == (B, C, H, W) and y.dtype == jnp.float32
    # Tolerance covers bf16 matmul operands + EUP approx reciprocal (sigmoid).
    max_err = float(jnp.max(jnp.abs(y - y_ref)))
    assert max_err < 2e-2, f"max abs error {max_err}"
    print("KERNEL_OK")
</pallas_src>

<mosaic_0001>
module attributes {stable_mosaic.version = 11 : i64} {
  func.func @_sga_kernel(%arg0: i32, %arg1: i32, %arg2: memref<1x1x16x336xbf16, #tpu.memory_space<vmem>>, %arg3: memref<32x208xbf16, #tpu.memory_space<vmem>>, %arg4: memref<32x1xf32, #tpu.memory_space<vmem>>, %arg5: memref<1x16x256xf32, #tpu.memory_space<vmem>>, %arg6: memref<208x256xbf16, #tpu.memory_space<vmem>>) attributes {dimension_semantics = [#tpu.dimension_semantics<parallel>, #tpu.dimension_semantics<parallel>], iteration_bounds = array<i64: 2, 2>, scalar_prefetch = 0 : i64, scratch_operands = 1 : i64, tpu.core_type = #tpu.core_type<tc>, window_params = [{transform_indices = @transform_0, window_bounds = array<i64: 1, 1, 16, 336>}, {pipeline_mode = #tpu.pipeline_mode<synchronous>, transform_indices = @transform_1, window_bounds = array<i64: 32, 208>}, {pipeline_mode = #tpu.pipeline_mode<synchronous>, transform_indices = @transform_2, window_bounds = array<i64: 32, 1>}, {transform_indices = @transform_3, window_bounds = array<i64: 1, 16, 256>}]} {
    %c0 = arith.constant 0 : index
    %c0_0 = arith.constant 0 : index
    %c0_1 = arith.constant 0 : index
    %c0_2 = arith.constant 0 : index
    %0 = vector.load %arg2[%c0, %c0_0, %c0_1, %c0_2] : memref<1x1x16x336xbf16, #tpu.memory_space<vmem>>, vector<1x1x16x256xbf16>
    %1 = vector.shape_cast %0 : vector<1x1x16x256xbf16> to vector<16x256xbf16>
    %c0_3 = arith.constant 0 : index
    %c0_4 = arith.constant 0 : index
    %2 = vector.load %arg6[%c0_3, %c0_4] : memref<208x256xbf16, #tpu.memory_space<vmem>>, vector<16x256xbf16>
    tpu.vector_store %arg6[%c0_3, %c0_4], %1 {strides = array<i32>} : memref<208x256xbf16, #tpu.memory_space<vmem>>, vector<16x256xbf16>,
    %c0_5 = arith.constant 0 : index
    %c0_6 = arith.constant 0 : index
    %c0_7 = arith.constant 0 : index
    %c19 = arith.constant 19 : index
    %3 = vector.load %arg2[%c0_5, %c0_6, %c0_7, %c19] : memref<1x1x16x336xbf16, #tpu.memory_space<vmem>>, vector<1x1x16x256xbf16>
    %4 = vector.shape_cast %3 : vector<1x1x16x256xbf16> to vector<16x256xbf16>
    %c16 = arith.constant 16 : index
    %c0_8 = arith.constant 0 : index
    %5 = vector.load %arg6[%c16, %c0_8] : memref<208x256xbf16, #tpu.memory_space<vmem>>, vector<16x256xbf16>
    tpu.vector_store %arg6[%c16, %c0_8], %4 {strides = array<i32>} : memref<208x256xbf16, #tpu.memory_space<vmem>>, vector<16x256xbf16>,
    %c0_9 = arith.constant 0 : index
    %c0_10 = arith.constant 0 : index
    %c0_11 = arith.constant 0 : index
    %c20 = arith.constant 20 : index
    %6 = vector.load %arg2[%c0_9, %c0_10, %c0_11, %c20] : memref<1x1x16x336xbf16, #tpu.memory_space<vmem>>, vector<1x1x16x256xbf16>
    %7 = vector.shape_cast %6 : vector<1x1x16x256xbf16> to vector<16x256xbf16>
    %c32 = arith.constant 32 : index
    %c0_12 = arith.constant 0 : index
    %8 = vector.load %arg6[%c32, %c0_12] : memref<208x256xbf16, #tpu.memory_space<vmem>>, vector<16x256xbf16>
    tpu.vector_store %arg6[%c32, %c0_12], %7 {strides = array<i32>} : memref<208x256xbf16, #tpu.memory_space<vmem>>, vector<16x256xbf16>,
    %c0_13 = arith.constant 0 : index
    %c0_14 = arith.constant 0 : index
    %c0_15 = arith.constant 0 : index
    %c21 = arith.constant 21 : index
    %9 = vector.load %arg2[%c0_13, %c0_14, %c0_15, %c21] : memref<1x1x16x336xbf16, #tpu.memory_space<vmem>>, vector<1x1x16x256xbf16>
    %10 = vector.shape_cast %9 : vector<1x1x16x256xbf16> to vector<16x256xbf16>
    %c48 = arith.constant 48 : index
    %c0_16 = arith.constant 0 : index
    %11 = vector.load %arg6[%c48, %c0_16] : memref<208x256xbf16, #tpu.memory_space<vmem>>, vector<16x256xbf16>
    tpu.vector_store %arg6[%c48, %c0_16], %10 {strides = array<i32>} : memref<208x256xbf16, #tpu.memory_space<vmem>>, vector<16x256xbf16>,
    %c0_17 = arith.constant 0 : index
    %c0_18 = arith.constant 0 : index
    %c0_19 = arith.constant 0 : index
    %c38 = arith.constant 38 : index
    %12 = vector.load %arg2[%c0_17, %c0_18, %c0_19, %c38] : memref<1x1x16x336xbf16, #tpu.memory_space<vmem>>, vector<1x1x16x256xbf16>
    %13 = vector.shape_cast %12 : vector<1x1x16x256xbf16> to vector<16x256xbf16>
    %c64 = arith.constant 64 : index
    %c0_20 = arith.constant 0 : index
    %14 = vector.load %arg6[%c64, %c0_20] : memref<208x256xbf16, #tpu.memory_space<vmem>>, vector<16x256xbf16>
    tpu.vector_store %arg6[%c64, %c0_20], %13 {strides = array<i32>} : memref<208x256xbf16, #tpu.memory_space<vmem>>, vector<16x256xbf16>,
    %c0_21 = arith.constant 0 : index
    %c0_22 = arith.constant 0 : index
    %c0_23 = arith.constant 0 : index
    %c39 = arith.constant 39 : index
    %15 = vector.load %arg2[%c0_21, %c0_22, %c0_23, %c39] : memref<1x1x16x336xbf16, #tpu.memory_space<vmem>>, vector<1x1x16x256xbf16>
    %16 = vector.shape_cast %15 : vector<1x1x16x256xbf16> to vector<16x256xbf16>
    %c80 = arith.constant 80 : index
    %c0_24 = arith.constant 0 : index
    %17 = vector.load %arg6[%c80, %c0_24] : memref<208x256xbf16, #tpu.memory_space<vmem>>, vector<16x256xbf16>
    tpu.vector_store %arg6[%c80, %c0_24], %16 {strides = array<i32>} : memref<208x256xbf16, #tpu.memory_space<vmem>>, vector<16x256xbf16>,
    %c0_25 = arith.constant 0 : index
    %c0_26 = arith.constant 0 : index
    %c0_27 = arith.constant 0 : index
    %c40 = arith.constant 40 : index
    %18 = vector.load %arg2[%c0_25, %c0_26, %c0_27, %c40] : memref<1x1x16x336xbf16, #tpu.memory_space<vmem>>, vector<1x1x16x256xbf16>
    %19 = vector.shape_cast %18 : vector<1x1x16x256xbf16> to vector<16x256xbf16>
    %c96 = arith.constant 96 : index
    %c0_28 = arith.constant 0 : index
    %20 = vector.load %arg6[%c96, %c0_28] : memref<208x256xbf16, #tpu.memory_space<vmem>>, vector<16x256xbf16>
    tpu.vector_store %arg6[%c96, %c0_28], %19 {strides = array<i32>} : memref<208x256xbf16, #tpu.memory_space<vmem>>, vector<16x256xbf16>,
    %c0_29 = arith.constant 0 : index
    %c0_30 = arith.constant 0 : index
    %c0_31 = arith.constant 0 : index
    %c41 = arith.constant 41 : index
    %21 = vector.load %arg2[%c0_29, %c0_30, %c0_31, %c41] : memref<1x1x16x336xbf16, #tpu.memory_space<vmem>>, vector<1x1x16x256xbf16>
    %22 = vector.shape_cast %21 : vector<1x1x16x256xbf16> to vector<16x256xbf16>
    %c112 = arith.constant 112 : index
    %c0_32 = arith.constant 0 : index
    %23 = vector.load %arg6[%c112, %c0_32] : memref<208x256xbf16, #tpu.memory_space<vmem>>, vector<16x256xbf16>
    tpu.vector_store %arg6[%c112, %c0_32], %22 {strides = array<i32>} : memref<208x256xbf16, #tpu.memory_space<vmem>>, vector<16x256xbf16>,
    %c0_33 = arith.constant 0 : index
    %c0_34 = arith.constant 0 : index
    %c0_35 = arith.constant 0 : index
    %c42 = arith.constant 42 : index
    %24 = vector.load %arg2[%c0_33, %c0_34, %c0_35, %c42] : memref<1x1x16x336xbf16, #tpu.memory_space<vmem>>, vector<1x1x16x256xbf16>
    %25 = vector.shape_cast %24 : vector<1x1x16x256xbf16> to vector<16x256xbf16>
    %c128 = arith.constant 128 : index
    %c0_36 = arith.constant 0 : index
    %26 = vector.load %arg6[%c128, %c0_36] : memref<208x256xbf16, #tpu.memory_space<vmem>>, vector<16x256xbf16>
    tpu.vector_store %arg6[%c128, %c0_36], %25 {strides = array<i32>} : memref<208x256xbf16, #tpu.memory_space<vmem>>, vector<16x256xbf16>,
    %c0_37 = arith.constant 0 : index
    %c0_38 = arith.constant 0 : index
    %c0_39 = arith.constant 0 : index
    %c59 = arith.constant 59 : index
    %27 = vector.load %arg2[%c0_37, %c0_38, %c0_39, %c59] : memref<1x1x16x336xbf16, #tpu.memory_space<vmem>>, vector<1x1x16x256xbf16>
    %28 = vector.shape_cast %27 : vector<1x1x16x256xbf16> to vector<16x256xbf16>
    %c144 = arith.constant 144 : index
    %c0_40 = arith.constant 0 : index
    %29 = vector.load %arg6[%c144, %c0_40] : memref<208x256xbf16, #tpu.memory_space<vmem>>, vector<16x256xbf16>
    tpu.vector_store %arg6[%c144, %c0_40], %28 {strides = array<i32>} : memref<208x256xbf16, #tpu.memory_space<vmem>>, vector<16x256xbf16>,
    %c0_41 = arith.constant 0 : index
    %c0_42 = arith.constant 0 : index
    %c0_43 = arith.constant 0 : index
    %c60 = arith.constant 60 : index
    %30 = vector.load %arg2[%c0_41, %c0_42, %c0_43, %c60] : memref<1x1x16x336xbf16, #tpu.memory_space<vmem>>, vector<1x1x16x256xbf16>
    %31 = vector.shape_cast %30 : vector<1x1x16x256xbf16> to vector<16x256xbf16>
    %c160 = arith.constant 160 : index
    %c0_44 = arith.constant 0 : index
    %32 = vector.load %arg6[%c160, %c0_44] : memref<208x256xbf16, #tpu.memory_space<vmem>>, vector<16x256xbf16>
    tpu.vector_store %arg6[%c160, %c0_44], %31 {strides = array<i32>} : memref<208x256xbf16, #tpu.memory_space<vmem>>, vector<16x256xbf16>,
    %c0_45 = arith.constant 0 : index
    %c0_46 = arith.constant 0 : index
    %c0_47 = arith.constant 0 : index
    %c61 = arith.constant 61 : index
    %33 = vector.load %arg2[%c0_45, %c0_46, %c0_47, %c61] : memref<1x1x16x336xbf16, #tpu.memory_space<vmem>>, vector<1x1x16x256xbf16>
    %34 = vector.shape_cast %33 : vector<1x1x16x256xbf16> to vector<16x256xbf16>
    %c176 = arith.constant 176 : index
    %c0_48 = arith.constant 0 : index
    %35 = vector.load %arg6[%c176, %c0_48] : memref<208x256xbf16, #tpu.memory_space<vmem>>, vector<16x256xbf16>
    tpu.vector_store %arg6[%c176, %c0_48], %34 {strides = array<i32>} : memref<208x256xbf16, #tpu.memory_space<vmem>>, vector<16x256xbf16>,
    %c0_49 = arith.constant 0 : index
    %c0_50 = arith.constant 0 : index
    %c0_51 = arith.constant 0 : index
    %c80_52 = arith.constant 80 : index
    %36 = vector.load %arg2[%c0_49, %c0_50, %c0_51, %c80_52] : memref<1x1x16x336xbf16, #tpu.memory_space<vmem>>, vector<1x1x16x256xbf16>
    %37 = vector.shape_cast %36 : vector<1x1x16x256xbf16> to vector<16x256xbf16>
    %c192 = arith.constant 192 : index
    %c0_53 = arith.constant 0 : index
    %38 = vector.load %arg6[%c192, %c0_53] : memref<208x256xbf16, #tpu.memory_space<vmem>>, vector<16x256xbf16>
    tpu.vector_store %arg6[%c192, %c0_53], %37 {strides = array<i32>} : memref<208x256xbf16, #tpu.memory_space<vmem>>, vector<16x256xbf16>,
    %c0_54 = arith.constant 0 : index
    %c0_55 = arith.constant 0 : index
    %39 = vector.load %arg3[%c0_54, %c0_55] : memref<32x208xbf16, #tpu.memory_space<vmem>>, vector<32x208xbf16>
    %c0_56 = arith.constant 0 : index
    %c0_57 = arith.constant 0 : index
    %40 = vector.load %arg6[%c0_56, %c0_57] : memref<208x256xbf16, #tpu.memory_space<vmem>>, vector<208x256xbf16>
    %cst = arith.constant dense<0.000000e+00> : vector<32x256xf32>
    %41 = tpu.matmul %39, %40, %cst {dimension_numbers = #tpu.dot_dimension_numbers<[1], [0], [0], [1], [0, 0, 1, 1], [], []>} : vector<32x208xbf16>, vector<208x256xbf16>, vector<32x256xf32> -> vector<32x256xf32>
    %c0_58 = arith.constant 0 : index
    %c0_59 = arith.constant 0 : index
    %42 = vector.load %arg4[%c0_58, %c0_59] : memref<32x1xf32, #tpu.memory_space<vmem>>, vector<32x1xf32>
    %43 = vector.broadcast %42 : vector<32x1xf32> to vector<32x256xf32>
    %44 = arith.addf %41, %43 : vector<32x256xf32>
    %45 = vector.extract_strided_slice %44 {offsets = [0, 0], sizes = [16, 256], strides = [1, 1]} : vector<32x256xf32> to vector<16x256xf32>
    %cst_60 = arith.constant 0.000000e+00 : f32
    %46 = vector.broadcast %cst_60 : f32 to vector<16x256xf32>
    %47 = arith.subf %46, %45 : vector<16x256xf32>
    %48 = math.exp %47 : vector<16x256xf32>
    %cst_61 = arith.constant 1.000000e+00 : f32
    %49 = vector.broadcast %cst_61 : f32 to vector<16x256xf32>
    %50 = arith.addf %49, %48 : vector<16x256xf32>
    %51 = tpu.reciprocal %50 {approx = true} : vector<16x256xf32> -> vector<16x256xf32>
    %52 = vector.extract_strided_slice %44 {offsets = [16, 0], sizes = [16, 256], strides = [1, 1]} : vector<32x256xf32> to vector<16x256xf32>
    %cst_62 = arith.constant 0.000000e+00 : f32
    %53 = vector.broadcast %cst_62 : f32 to vector<16x256xf32>
    %54 = arith.maximumf %52, %53 : vector<16x256xf32>
    %55 = arith.mulf %54, %51 : vector<16x256xf32>
    %c0_63 = arith.constant 0 : index
    %c0_64 = arith.constant 0 : index
    %c0_65 = arith.constant 0 : index
    %56 = vector.load %arg5[%c0_63, %c0_64, %c0_65] : memref<1x16x256xf32, #tpu.memory_space<vmem>>, vector<1x16x256xf32>
    %57 = vector.shape_cast %56 : vector<1x16x256xf32> to vector<16x256xf32>
    %58 = vector.shape_cast %55 : vector<16x256xf32> to vector<1x16x256xf32>
    tpu.vector_store %arg5[%c0_63, %c0_64, %c0_65], %58 {strides = array<i32>} : memref<1x16x256xf32, #tpu.memory_space<vmem>>, vector<1x16x256xf32>,
    return
  }
  func.func @transform_0(%arg0: i32, %arg1: i32) -> (i32, i32, i32, i32) {
    %c0_i32 = arith.constant 0 : i32
    %c0_i32_0 = arith.constant 0 : i32
    %c0_i32_1 = arith.constant 0 : i32
    return %arg0, %arg1, %c0_i32, %c0_i32_0 : i32, i32, i32, i32
  }
  func.func @transform_1(%arg0: i32, %arg1: i32) -> (i32, i32) {
    %c0_i32 = arith.constant 0 : i32
    %c0_i32_0 = arith.constant 0 : i32
    %c0_i32_1 = arith.constant 0 : i32
    return %c0_i32, %c0_i32_0 : i32, i32
  }
  func.func @transform_2(%arg0: i32, %arg1: i32) -> (i32, i32) {
    %c0_i32 = arith.constant 0 : i32
    %c0_i32_0 = arith.constant 0 : i32
    %c0_i32_1 = arith.constant 0 : i32
    return %c0_i32, %c0_i32_0 : i32, i32
  }
  func.func @transform_3(%arg0: i32, %arg1: i32) -> (i32, i32, i32) {
    %c0_i32 = arith.constant 0 : i32
    %c0_i32_0 = arith.constant 0 : i32
    return %arg0, %c0_i32, %arg1 : i32, i32, i32
  }
}

</mosaic_0001>

<bundles_post_ra>
// kernel: spatial_group_attention_forward.1
= control target key start
LH: loop header
LB: loop body
LE: loop exit
PB: predicated region body
PF: predicated region fallthrough
CT: control target
= control target key end

     0   :  { %s1320_s12 = smov 0   ;;  %s1322_s13 = smov 0   ;;  %s1565_s0 = inlined_call_operand.vmem [shape: bf16[2,2,16,336], index: 0, kind: input, shape index: {}]   ;;  %s1566_s1 = inlined_call_operand.vmem [shape: bf16[32,208], index: 1, kind: input, shape index: {}]   ;;  %s1567_s2 = inlined_call_operand.vmem [shape: f32[32,1], index: 2, kind: input, shape index: {}]   ;;  %s1568_s3 = inlined_call_operand.vmem [shape: f32[2,16,512], index: 3, kind: output, shape index: {}]  }
   0x1   :  { %s1324_s14 = smov 0   ;;  %s1326_s15 = smov 0  }
   0x2   :  { %s1328_s16 = smov 0   ;;  %s1330_s17 = smov 0  }
   0x3   :  { %s1332_s18 = smov 0  }
   0x4 LB: > { %s22_s19 = sadd.s32 1, %s1277_s16  ;;  %s25_s20 = sadd.s32 1, %s1281_s17  ;;  %s1285_s18 = sphi %s1332_s18, %s13_s18   ;;  %s1281_s17 = sphi %s1330_s17, %s1575_s17   ;;  %s1277_s16 = sphi %s1328_s16, %s1574_s16   ;;  %s1273_s15 = sphi %s1326_s15, %s1573_s15   ;;  %s1269_s14 = sphi %s1324_s14, %s1572_s14   ;;  %s1265_s13 = sphi %s1322_s13, %s1571_s13   ;;  %s1261_s12 = sphi %s1320_s12, %s1570_s12  }
   0x5   : > { %p23_p0 = scmp.ge.s32.totalorder %s22_s19, 2  ;;  %s974_s21 = sadd.s32 4294967295, %s1285_s18  }
   0x6   : > { %p114_p1 = scmp.ne.s32.totalorder %s1265_s13, %s1261_s12  ;;  %p115_p2 = scmp.eq.s32.totalorder %s974_s21, 3 }
   0x7   : > { %s1577_s19 = smov (%p23_p0, %s22_s19), 0  ;;  %s1579_s20 = smov (!%p23_p0, %s25_s20), %s1281_s17 }
   0x8   : > { %s100_s22 = ssub.s32 %s1277_s16, %s1577_s19  ;;  %p27_p3 = scmp.ge.s32.totalorder %s1579_s20, 2 }
   0x9   : > { %p978_p4 = scmp.ge.s32.totalorder %s1285_s18, 1  ;;  %p1366_p5 = por %p115_p2, %p114_p1 }
   0xa   : > { %p157_p6 = scmp.lt.s32.totalorder %s1285_s18, 5  ;;  %s1581_s20 = smov (%p27_p3, %s1579_s20), 0 }
   0xb   : > { %s99_s24 = ssub.s32 %s1281_s17, %s1581_s20  ;;  %s104_s26 = sadd.s32 1, %s1265_s13 }
   0xc   : > { %p158_p7 = pnand %p978_p4, %p157_p6  ;;  %s101_s25 = sor.u32 %s100_s22, %s99_s24 }
   0xd   : > { %p102_p8 = scmp.eq.s32.totalorder %s101_s25, 0  ;;  %p184_p9 = scmp.lt.s32.totalorder (!%p158_p7), %s1273_s15, 1 }
   0xe   : > { %161 = sbr.rel (%p158_p7) target bundleno = 454 (0x1c6), region = 32  ;;  %p186_p10 = scmp.lt.s32.totalorder (!%p158_p7), %s1269_s14, 1 }
   0xf   : > { %s1377_s27 = scalar_select %p102_p8, %s1265_s13, %s104_s26  }
  0x10   : > { %s1287_s10 = smov (!%p158_p7), 87   ;;  %s1288_s11 = smov (!%p158_p7), 88  }
  0x11   : > { %s1289_s21 = smov (!%p158_p7), 89   ;;  %s1290_s22 = smov (!%p158_p7), 90  }
  0x12   : > { %s1291_s24 = smov (!%p158_p7), 48   ;;  %s1292_s25 = smov (!%p158_p7), 107  }
  0x13   : > { %s185_s28 = scalar_select %p184_p9, %s1273_s15, 1  ;;  %vm219_vm0 = vcmask 1043456   ;;  %vm366_vm1 = vcmask 719872   ;;  %vm395_vm2 = vcmask 711680   ;;  %vm337_vm3 = vcmask 728064  }
  0x14   : > { %s187_s29 = scalar_select %p186_p10, %s1269_s14, 1  ;;  %vm308_vm4 = vcmask 736256   ;;  %vm540_vm5 = vcmask 392192   ;;  %vm279_vm6 = vcmask 875520   ;;  %vm511_vm7 = vcmask 547840  }
  0x15   : > { %s1142_s30 = smul.u32 12, %s185_s28  ;;  %s1293_s26 = smov 67   ;;  %vm250_vm8 = vcmask 883712   ;;  %vm482_vm9 = vcmask 556032   ;;  %vm221_vm10 = vcmask 891904   ;;  %vm453_vm11 = vcmask 564224  }
  0x16   : > { %s1141_s4 = smul.u32 6, %s187_s29  ;;  %s1294_s28 = smov 108   ;;  %vm424_vm12 = vcmask 703488   ;;  %vm750_vm13 = vcmask 654336  }
  0x17   : > { %s1295_s29 = smov 68  }
  0x18   : > { %s190_s5 = sadd.s32 %s1142_s30, %s1141_s4  ;;  %s1296_s30 = smov 109  }
  0x19   : > { %s980_s6 = sshll.u32 %s190_s5, 2  ;;  %s1297_s4 = smov 69  }
  0x1a   : > { %s1386_s9 = scalar_lea.vmem %s1565_s0, %s980_s6  ;;  %s1298_s5 = smov 86  }
  0x1b   : > { %v1389_v0 = vld [vmem:[%s1386_s9 + $0xc] sm:$0xff]  ;;  %v1392_v1 = vld [vmem:[%s1386_s9] sm:$0xff]  ;;  %v377_v2 = vld [vmem:[%s1386_s9 + $0x14] sm:$0xf] }
  0x1c   : > { %386 = vrot.lane.b32.xlu1 %v1389_v0, %s1287_s10  ;;  %382 = vrot.lane.b32.xlu0 %v1392_v1, %s1287_s10  ;;  %197 = vst [vmem:[#allocation2] sm:$0xff] %v1392_v1  ;;  %v375_v3 = vld [vmem:[%s1386_s9 + $0x8] sm:$0xf]  ;;  %v348_v5 = vld [vmem:[%s1386_s9 + $0x14] sm:$0xf] }
  0x1d   : > { %353 = vrot.lane.b32.xlu2 %v1392_v1, %s1288_s11  ;;  %198 = vst [vmem:[#allocation2 + $0x8] sm:$0xff] %v1389_v0  ;;  %v346_v4 = vld [vmem:[%s1386_s9 + $0x8] sm:$0xf]  ;;  %v319_v7 = vld [vmem:[%s1386_s9 + $0x14] sm:$0xf] }
  0x1e   : > { %v317_v6 = vld [vmem:[%s1386_s9 + $0x8] sm:$0xf]  ;;  %v290_v9 = vld [vmem:[%s1386_s9 + $0x14] sm:$0xf] }
  0x1f   : > { %v288_v8 = vld [vmem:[%s1386_s9 + $0x8] sm:$0xf]  ;;  %v522_v11 = vld [vmem:[%s1386_s9 + $0x14] sm:$0xf] }
  0x20   : > { %v520_v10 = vld [vmem:[%s1386_s9 + $0x8] sm:$0xf]  ;;  %v261_v13 = vld [vmem:[%s1386_s9 + $0x14] sm:$0xf] }
  0x21   : > { %v259_v12 = vld [vmem:[%s1386_s9 + $0x8] sm:$0xf]  ;;  %v493_v15 = vld [vmem:[%s1386_s9 + $0x14] sm:$0xf] }
  0x22   : > { %v491_v14 = vld [vmem:[%s1386_s9 + $0x8] sm:$0xf]  ;;  %v232_v17 = vld [vmem:[%s1386_s9 + $0x14] sm:$0xf] }
  0x23   : > { %v230_v16 = vld [vmem:[%s1386_s9 + $0x8] sm:$0xf]  ;;  %v464_v19 = vld [vmem:[%s1386_s9 + $0x14] sm:$0xf] }
  0x24   : > { %388 = vrot.lane.b32.xlu1 %v377_v2, %s1287_s10  ;;  %384 = vrot.lane.b32.xlu0 %v375_v3, %s1287_s10  ;;  %v462_v18 = vld [vmem:[%s1386_s9 + $0x8] sm:$0xf]  ;;  %v202_v25 = vld [vmem:[%s1386_s9 + $0x14] sm:$0xf] }
  0x25   : > { %355 = vrot.lane.b32.xlu2 %v346_v4, %s1288_s11  ;;  %v200_v21 = vld [vmem:[%s1386_s9 + $0x8] sm:$0xf]  ;;  %v435_v30 = vld [vmem:[%s1386_s9 + $0x14] sm:$0xf] }
  0x26   : > { %v433_v27 = vld [vmem:[%s1386_s9 + $0x8] sm:$0xf]  ;;  %v406_v35 = vld [vmem:[%s1386_s9 + $0x14] sm:$0xf] }
  0x27   : > { %v404_v34 = vld [vmem:[%s1386_s9 + $0x8] sm:$0xf] }
  0x2c   : > { %359 = vrot.lane.b32.xlu1 %v348_v5, %s1288_s11  ;;  %357 = vrot.lane.b32.xlu0 %v1389_v0, %s1288_s11 }
  0x2d   : > { %324 = vrot.lane.b32.xlu2 %v1392_v1, %s1289_s21 }
  0x34   : > { %328 = vrot.lane.b32.xlu1 %v1389_v0, %s1289_s21  ;;  %326 = vrot.lane.b32.xlu0 %v317_v6, %s1289_s21 }
  0x35   : > { %330 = vrot.lane.b32.xlu2 %v319_v7, %s1289_s21 }
  0x3c   : > { %297 = vrot.lane.b32.xlu1 %v288_v8, %s1290_s22  ;;  %295 = vrot.lane.b32.xlu0 %v1392_v1, %s1290_s22 }
  0x3d   : > { %299 = vrot.lane.b32.xlu2 %v1389_v0, %s1290_s22 }
  0x44   : > { %527 = vrot.lane.b32.xlu1 %v1392_v1, %s1291_s24  ;;  %301 = vrot.lane.b32.xlu0 %v290_v9, %s1290_s22 }
  0x45   : > { %529 = vrot.lane.b32.xlu2 %v520_v10, %s1291_s24 }
  0x4c   : > { %533 = vrot.lane.b32.xlu1 %v522_v11, %s1291_s24  ;;  %531 = vrot.lane.b32.xlu0 %v1389_v0, %s1291_s24  ;;  %s181_s24 = sand.u32 1, %s1261_s12  }
  0x4d   : > { %266 = vrot.lane.b32.xlu2 %v1392_v1, %s1292_s25 }
  0x54   : > { %270 = vrot.lane.b32.xlu1 %v1389_v0, %s1292_s25  ;;  %268 = vrot.lane.b32.xlu0 %v259_v12, %s1292_s25 }
  0x55   : > { %272 = vrot.lane.b32.xlu2 %v261_v13, %s1292_s25  ;;  %s979_s25 = sshll.u32 %s181_s24, 5 }
  0x56   : > { %s1527_s12 = scalar_lea.vmem [#allocation3], %s979_s25 }
  0x5c   : > { %500 = vrot.lane.b32.xlu1 %v491_v14, %s1293_s26  ;;  %498 = vrot.lane.b32.xlu0 %v1392_v1, %s1293_s26 }
  0x5d   : > { %502 = vrot.lane.b32.xlu2 %v1389_v0, %s1293_s26 }
  0x64   : > { %504 = vrot.lane.b32.xlu0 %v493_v15, %s1293_s26  ;;  %237 = vrot.lane.b32.xlu1 %v1392_v1, %s1294_s28  ;;  %s1106_s26 = sshll.u32 (%p1366_p5), %s1269_s14, 1 }
  0x65   : > { %239 = vrot.lane.b32.xlu2 %v230_v16, %s1294_s28 }
  0x6c   : > { %241 = vrot.lane.b32.xlu0 %v1389_v0, %s1294_s28  ;;  %243 = vrot.lane.b32.xlu1 %v232_v17, %s1294_s28  ;;  %s1107_s28 = sshll.u32 (%p1366_p5), %s1273_s15, 3 }
  0x6d   : > { %469 = vrot.lane.b32.xlu2 %v1392_v1, %s1295_s29 }
  0x74   : > { %471 = vrot.lane.b32.xlu0 %v462_v18, %s1295_s29  ;;  %473 = vrot.lane.b32.xlu1 %v1389_v0, %s1295_s29 }
  0x75   : > { %475 = vrot.lane.b32.xlu2 %v464_v19, %s1295_s29  ;;  %s874_s29 = sadd.s32 (%p1366_p5), %s1107_s28, %s1106_s26 }
  0x77   : > { %v354_v20 = vpop.permute.xlu2 %353 }
  0x78   : > { %v361_v22 = vrot.slane %v354_v20, 4 }
  0x7c   : > { %209 = vrot.lane.b32.xlu1 %v200_v21, %s1296_s30  ;;  %207 = vrot.lane.b32.xlu0 %v1392_v1, %s1296_s30 }
  0x7d   : > { %211 = vrot.lane.b32.xlu2 %v1389_v0, %s1296_s30 }
  0x7f   : > { %v356_v23 = vpop.permute.xlu2 %355 }
  0x80   : > { %v362_v24 = vrot.slane %v356_v23, 4 }
  0x82   : > { %v365_v26 = vsel %vm219_vm0, %v361_v22, %v362_v24 }
  0x83   : > { %v367_v28 = vsel %vm366_vm1, %v354_v20, %v365_v26 }
  0x84   : > { %440 = vrot.lane.b32.xlu1 %v1392_v1, %s1297_s4  ;;  %213 = vrot.lane.b32.xlu0 %v202_v25, %s1296_s30  ;;  %372 = vst [vmem:[#allocation2 + $0x60] sm:$0xff] %v367_v28  ;;  %s1108_s30 = sshll.u32 (%p1366_p5), %s874_s29, 3 }
  0x85   : > { %442 = vrot.lane.b32.xlu2 %v433_v27, %s1297_s4  ;;  %s876_s6 = scalar_lea.vmem (%p1366_p5), %s1568_s3, %s1108_s30 }
  0x87   : > { %v325_v29 = vpop.permute.xlu2 %324 }
  0x88   : > { %v332_v63 = vrot.slane %v325_v29, 4 }
  0x8b   : > { %v1047_v5 = vld [vmem:[#allocation2 + $0x60] sm:$0xf]  ;;  %v1127_v9 = vld [vmem:[#allocation2 + $0x64] sm:$0xf] }
  0x8c   : > { %446 = vrot.lane.b32.xlu1 %v435_v30, %s1297_s4  ;;  %444 = vrot.lane.b32.xlu0 %v1389_v0, %s1297_s4 }
  0x8d   : > { %411 = vrot.lane.b32.xlu2 %v1392_v1, %s1298_s5 }
  0x8e   : > { %v387_v31 = vpop.permute.xlu1 %386  ;;  %v383_v32 = vpop.permute.xlu0 %382 }
  0x8f   : > { %v331_v33 = vpop.permute.xlu2 %330  ;;  %v392_v38 = vrot.slane %v387_v31, 4  ;;  %v390_v39 = vrot.slane %v383_v32, 4 }
  0x90   : > { %v335_v60 = vrot.slane %v331_v33, 4 }
  0x94   : > { %415 = vrot.lane.b32.xlu1 %v1389_v0, %s1298_s5  ;;  %413 = vrot.lane.b32.xlu0 %v404_v34, %s1298_s5 }
  0x95   : > { %417 = vrot.lane.b32.xlu2 %v406_v35, %s1298_s5 }
  0x96   : > { %v389_v36 = vpop.permute.xlu1 %388  ;;  %v385_v37 = vpop.permute.xlu0 %384 }
  0x97   : > { %v393_v40 = vrot.slane %v389_v36, 4  ;;  %v391_v41 = vrot.slane %v385_v37, 4  ;;  %v1446_v42 = vpop.permute.xlu2 %299 }
  0x99   : > { %v397_v43 = vsel %vm219_vm0, %v392_v38, %v393_v40  ;;  %v394_v44 = vsel %vm219_vm0, %v390_v39, %v391_v41 }
  0x9a   : > { %v398_v45 = vsel %vm395_vm2, %v387_v31, %v397_v43  ;;  %v396_v46 = vsel %vm395_vm2, %v383_v32, %v394_v44 }
  0x9b   : > { %402 = vst [vmem:[#allocation2 + $0x78] sm:$0xff] %v398_v45 }
  0x9c   : > { %401 = vst [vmem:[#allocation2 + $0x70] sm:$0xff] %v396_v46 }
  0x9e   : > { %v360_v47 = vpop.permute.xlu1 %359  ;;  %v358_v48 = vpop.permute.xlu0 %357 }
  0x9f   : > { %v364_v49 = vrot.slane %v360_v47, 4  ;;  %v363_v50 = vrot.slane %v358_v48, 4  ;;  %v530_v51 = vpop.permute.xlu2 %529 }
  0xa0   : > { %v536_v26 = vrot.slane %v530_v51, 4 }
  0xa1   : > { %v368_v52 = vsel %vm219_vm0, %v363_v50, %v364_v49 }
  0xa2   : > { %v369_v53 = vsel %vm366_vm1, %v358_v48, %v368_v52  ;;  %v1130_v54 = vld [vmem:[#allocation2 + $0x74] sm:$0xf0]  ;;  %v1057_v55 = vld [vmem:[#allocation2 + $0x78] sm:$0xf0] }
  0xa3   : > { %373 = vst [vmem:[#allocation2 + $0x68] sm:$0xff] %v369_v53  ;;  %v1055_v56 = vld [vmem:[#allocation2 + $0x70] sm:$0xf]  ;;  %v1129_v57 = vld [vmem:[#allocation2 + $0x74] sm:$0xf] }
  0xa4   : > { %v1056_v58 = vor.u32 %v1130_v54, %v1055_v56  ;;  %v1060_v59 = vor.u32 %v1129_v57, %v1057_v55 }
  0xa6   : > { %757 = vmatpush.bf16.msra.mxu0 %v1056_v58  ;;  %795 = vmatpush.bf16.msra.mxu2 %v1060_v59  ;;  %v329_v61 = vpop.permute.xlu1 %328  ;;  %v327_v62 = vpop.permute.xlu0 %326 }
  0xa7   : > { %v334_v0 = vrot.slane %v329_v61, 4  ;;  %v333_v1 = vrot.slane %v327_v62, 4  ;;  %v1452_v2 = vpop.permute.xlu2 %266 }
  0xa8   : > { %v274_v53 = vrot.slane %v1452_v2, 4 }
  0xa9   : > { %v336_v3 = vsel %vm219_vm0, %v332_v63, %v333_v1  ;;  %v339_v4 = vsel %vm219_vm0, %v334_v0, %v335_v60 }
  0xaa   : > { %v338_v6 = vsel %vm337_vm3, %v325_v29, %v336_v3  ;;  %v340_v7 = vsel %vm337_vm3, %v329_v61, %v339_v4  ;;  %v1128_v8 = vld [vmem:[#allocation2 + $0x64] sm:$0xf0]  ;;  %v1049_v10 = vld [vmem:[#allocation2 + $0x68] sm:$0xf0]  ;;  %v305_v29 = vrot.slane %v1446_v42, 4 }
  0xab   : > { %343 = vst [vmem:[#allocation2 + $0x50] sm:$0xff] %v338_v6  ;;  %v1048_v11 = vor.u32 %v1128_v8, %v1047_v5  ;;  %v1052_v12 = vor.u32 %v1127_v9, %v1049_v10 }
  0xac   : > { %344 = vst [vmem:[#allocation2 + $0x58] sm:$0xff] %v340_v7 }
  0xad   : > { %758 = vmatpush.bf16.msra.mxu0 %v1048_v11  ;;  %796 = vmatpush.bf16.msra.mxu2 %v1052_v12 }
  0xae   : > { %v298_v13 = vpop.permute.xlu1 %297  ;;  %v296_v14 = vpop.permute.xlu0 %295 }
  0xaf   : > { %v304_v15 = vrot.slane %v298_v13, 4  ;;  %v303_v16 = vrot.slane %v296_v14, 4  ;;  %v273_v18 = vpop.permute.xlu2 %272 }
  0xb0   : > { %v277_v50 = vrot.slane %v273_v18, 4 }
  0xb1   : > { %v307_v17 = vsel %vm219_vm0, %v303_v16, %v304_v15 }
  0xb2   : > { %v309_v19 = vsel %vm308_vm4, %v296_v14, %v307_v17  ;;  %v1039_v20 = vld [vmem:[#allocation2 + $0x50] sm:$0xf]  ;;  %v1125_v21 = vld [vmem:[#allocation2 + $0x54] sm:$0xf] }
  0xb3   : > { %314 = vst [vmem:[#allocation2 + $0x40] sm:$0xff] %v309_v19  ;;  %v1126_v22 = vld [vmem:[#allocation2 + $0x54] sm:$0xf0]  ;;  %v1041_v23 = vld [vmem:[#allocation2 + $0x58] sm:$0xf0] }
  0xb4   : > { %v1040_v24 = vor.u32 %v1126_v22, %v1039_v20  ;;  %v1044_v25 = vor.u32 %v1125_v21, %v1041_v23 }
  0xb6   : > { %759 = vmatpush.bf16.msra.mxu0 %v1040_v24  ;;  %797 = vmatpush.bf16.msra.mxu2 %v1044_v25  ;;  %v528_v27 = vpop.permute.xlu1 %527  ;;  %v302_v28 = vpop.permute.xlu0 %301 }
  0xb7   : > { %v535_v30 = vrot.slane %v528_v27, 4  ;;  %v306_v31 = vrot.slane %v302_v28, 4  ;;  %v1463_v36 = vpop.permute.xlu2 %502 }
  0xb8   : > { %v508_v18 = vrot.slane %v1463_v36, 4 }
  0xb9   : > { %v539_v32 = vsel %vm219_vm0, %v535_v30, %v536_v26  ;;  %v310_v33 = vsel %vm219_vm0, %v305_v29, %v306_v31 }
  0xba   : > { %v541_v34 = vsel %vm540_vm5, %v528_v27, %v539_v32  ;;  %v311_v35 = vsel %vm308_vm4, %v1446_v42, %v310_v33  ;;  %v1031_v44 = vld [vmem:[#allocation2 + $0x40] sm:$0xf]  ;;  %v1123_v45 = vld [vmem:[#allocation2 + $0x44] sm:$0xf] }
  0xbb   : > { %546 = vst [vmem:[#allocation2 + $0xc0] sm:$0xff] %v541_v34 }
  0xbc   : > { %315 = vst [vmem:[#allocation2 + $0x48] sm:$0xff] %v311_v35 }
  0xbe   : > { %v534_v37 = vpop.permute.xlu1 %533  ;;  %v532_v38 = vpop.permute.xlu0 %531 }
  0xbf   : > { %v538_v39 = vrot.slane %v534_v37, 4  ;;  %v537_v40 = vrot.slane %v532_v38, 4  ;;  %v240_v42 = vpop.permute.xlu2 %239 }
  0xc0   : > { %v246_v15 = vrot.slane %v240_v42, 4 }
  0xc1   : > { %v542_v41 = vsel %vm219_vm0, %v537_v40, %v538_v39 }
  0xc2   : > { %v543_v43 = vsel %vm540_vm5, %v532_v38, %v542_v41  ;;  %v1095_v58 = vld [vmem:[#allocation2 + $0xc0] sm:$0xf]  ;;  %v1139_v62 = vld [vmem:[#allocation2 + $0xc4] sm:$0xf] }
  0xc3   : > { %547 = vst [vmem:[#allocation2 + $0xc8] sm:$0xff] %v543_v43  ;;  %v1124_v46 = vld [vmem:[#allocation2 + $0x44] sm:$0xf0]  ;;  %v1033_v47 = vld [vmem:[#allocation2 + $0x48] sm:$0xf0] }
  0xc4   : > { %v1032_v48 = vor.u32 %v1124_v46, %v1031_v44  ;;  %v1036_v49 = vor.u32 %v1123_v45, %v1033_v47 }
  0xc6   : > { %760 = vmatpush.bf16.msra.mxu0 %v1032_v48  ;;  %798 = vmatpush.bf16.msra.mxu2 %v1036_v49  ;;  %v271_v51 = vpop.permute.xlu1 %270  ;;  %v269_v52 = vpop.permute.xlu0 %268 }
  0xc7   : > { %v276_v54 = vrot.slane %v271_v51, 4  ;;  %v275_v55 = vrot.slane %v269_v52, 4  ;;  %v470_v7 = vpop.permute.xlu2 %469 }
  0xc8   : > { %v477_v43 = vrot.slane %v470_v7, 4 }
  0xc9   : > { %v278_v56 = vsel %vm219_vm0, %v274_v53, %v275_v55  ;;  %v281_v57 = vsel %vm219_vm0, %v276_v54, %v277_v50 }
  0xca   : > { %v280_v59 = vsel %vm279_vm6, %v1452_v2, %v278_v56  ;;  %v282_v60 = vsel %vm279_vm6, %v271_v51, %v281_v57  ;;  %v1140_v61 = vld [vmem:[#allocation2 + $0xc4] sm:$0xf0]  ;;  %v1097_v63 = vld [vmem:[#allocation2 + $0xc8] sm:$0xf0] }
  0xcb   : > { %285 = vst [vmem:[#allocation2 + $0x30] sm:$0xff] %v280_v59  ;;  %v1096_v0 = vor.u32 %v1140_v61, %v1095_v58  ;;  %v1100_v1 = vor.u32 %v1139_v62, %v1097_v63 }
  0xcc   : > { %286 = vst [vmem:[#allocation2 + $0x38] sm:$0xff] %v282_v60 }
  0xcd   : > { %779 = vmatpush.bf16.msra.mxu1 %v1096_v0  ;;  %817 = vmatpush.bf16.msra.mxu3 %v1100_v1 }
  0xce   : > { %v501_v3 = vpop.permute.xlu1 %500  ;;  %v499_v4 = vpop.permute.xlu0 %498 }
  0xcf   : > { %v507_v5 = vrot.slane %v501_v3, 4  ;;  %v506_v6 = vrot.slane %v499_v4, 4  ;;  %v476_v23 = vpop.permute.xlu2 %475 }
  0xd1   : > { %v510_v8 = vsel %vm219_vm0, %v506_v6, %v507_v5 }
  0xd2   : > { %v512_v2 = vsel %vm511_vm7, %v499_v4, %v510_v8  ;;  %v1023_v9 = vld [vmem:[#allocation2 + $0x30] sm:$0xf]  ;;  %v1121_v10 = vld [vmem:[#allocation2 + $0x34] sm:$0xf] }
  0xd3   : > { %517 = vst [vmem:[#allocation2 + $0xb0] sm:$0xff] %v512_v2  ;;  %v1122_v11 = vld [vmem:[#allocation2 + $0x34] sm:$0xf0]  ;;  %v1025_v12 = vld [vmem:[#allocation2 + $0x38] sm:$0xf0] }
  0xd4   : > { %v1024_v13 = vor.u32 %v1122_v11, %v1023_v9  ;;  %v1028_v14 = vor.u32 %v1121_v10, %v1025_v12 }
  0xd6   : > { %761 = vmatpush.bf16.msra.mxu0 %v1024_v13  ;;  %799 = vmatpush.bf16.msra.mxu2 %v1028_v14  ;;  %v505_v16 = vpop.permute.xlu0 %504  ;;  %v238_v17 = vpop.permute.xlu1 %237 }
  0xd7   : > { %v509_v19 = vrot.slane %v505_v16, 4  ;;  %v245_v20 = vrot.slane %v238_v17, 4  ;;  %v212_v39 = vpop.permute.xlu2 %211  ;;  %v578_v16 = vld [vmem:[%s1567_s2] sm:$0xff] }
  0xd8   : > { %v217_v8 = vrot.slane %v212_v39, 4 }
  0xd9   : > { %v513_v21 = vsel %vm219_vm0, %v508_v18, %v509_v19  ;;  %v249_v22 = vsel %vm219_vm0, %v245_v20, %v246_v15  ;;  %v579_v15 = vld [vmem:[%s1567_s2 + $0x8] sm:$0xff]  ;;  %v1299_v19 = vmov 0  }
  0xda   : > { %v514_v24 = vsel %vm511_vm7, %v1463_v36, %v513_v21  ;;  %v251_v25 = vsel %vm250_vm8, %v238_v17, %v249_v22  ;;  %v1087_v31 = vld [vmem:[#allocation2 + $0xb0] sm:$0xf]  ;;  %v1137_v34 = vld [vmem:[#allocation2 + $0xb4] sm:$0xf]  ;;  %v480_v36 = vrot.slane %v476_v23, 4  ;;  %1213 = vset.pattern.permute.xlu1 %v1299_v19  ;;  %1212 = vset.pattern.permute.xlu0 %v1299_v19 }
  0xdb   : > { %518 = vst [vmem:[#allocation2 + $0xb8] sm:$0xff] %v514_v24  ;;  %589 = vperm.xlu1 %1213, %v579_v15   ;;  %584 = vperm.xlu0 %1212, %v578_v16   ;;  %v999_v23 = vld [vmem:[#allocation2] sm:$0xf]  ;;  %v1116_v24 = vld [vmem:[#allocation2 + $0x4] sm:$0xf0] }
  0xdc   : > { %256 = vst [vmem:[#allocation2 + $0x20] sm:$0xff] %v251_v25  ;;  %1214 = vset.pattern.permute.xlu2 %v1299_v19  ;;  %v1115_v25 = vld [vmem:[#allocation2 + $0x4] sm:$0xf] }
  0xde   : > { %v242_v26 = vpop.permute.xlu0 %241  ;;  %v244_v27 = vpop.permute.xlu1 %243 }
  0xdf   : > { %v247_v28 = vrot.slane %v242_v26, 4  ;;  %v248_v29 = vrot.slane %v244_v27, 4  ;;  %v443_v55 = vpop.permute.xlu2 %442 }
  0xe0   : > { %v449_v5 = vrot.slane %v443_v55, 4 }
  0xe1   : > { %v252_v30 = vsel %vm219_vm0, %v247_v28, %v248_v29 }
  0xe2   : > { %v253_v32 = vsel %vm250_vm8, %v242_v26, %v252_v30  ;;  %v1138_v33 = vld [vmem:[#allocation2 + $0xb4] sm:$0xf0]  ;;  %v1089_v35 = vld [vmem:[#allocation2 + $0xb8] sm:$0xf0]  ;;  %v1001_v30 = vld [vmem:[#allocation2 + $0x8] sm:$0xf0] }
  0xe3   : > { %257 = vst [vmem:[#allocation2 + $0x28] sm:$0xff] %v253_v32  ;;  %v1088_v37 = vor.u32 %v1138_v33, %v1087_v31  ;;  %v1092_v38 = vor.u32 %v1137_v34, %v1089_v35  ;;  %v1015_v48 = vld [vmem:[#allocation2 + $0x20] sm:$0xf]  ;;  %v1119_v51 = vld [vmem:[#allocation2 + $0x24] sm:$0xf] }
  0xe5   : > { %780 = vmatpush.bf16.msra.mxu1 %v1088_v37  ;;  %818 = vmatpush.bf16.msra.mxu3 %v1092_v38 }
  0xe6   : > { %v472_v40 = vpop.permute.xlu0 %471  ;;  %v474_v41 = vpop.permute.xlu1 %473 }
  0xe7   : > { %v478_v44 = vrot.slane %v472_v40, 4  ;;  %v479_v45 = vrot.slane %v474_v41, 4  ;;  %v412_v10 = vpop.permute.xlu2 %411  ;;  %v983_v40 = vld [vmem:[%s1566_s1] sm:$0xf] }
  0xe9   : > { %v481_v46 = vsel %vm219_vm0, %v477_v43, %v478_v44  ;;  %v484_v47 = vsel %vm219_vm0, %v479_v45, %v480_v36  ;;  %v1004_v36 = vor.u32 %v1115_v25, %v1001_v30  ;;  %v419_v43 = vrot.slane %v412_v10, 4 }
  0xea   : > { %v483_v49 = vsel %vm482_vm9, %v470_v7, %v481_v46  ;;  %v485_v50 = vsel %vm482_vm9, %v474_v41, %v484_v47  ;;  %v1120_v42 = vld [vmem:[#allocation2 + $0x24] sm:$0xf0]  ;;  %v1017_v52 = vld [vmem:[#allocation2 + $0x28] sm:$0xf0] }
  0xeb   : > { %488 = vst [vmem:[#allocation2 + $0xa0] sm:$0xff] %v483_v49  ;;  %v1016_v53 = vor.u32 %v1120_v42, %v1015_v48  ;;  %v1020_v54 = vor.u32 %v1119_v51, %v1017_v52  ;;  %v1112_v41 = vld [vmem:[%s1566_s1 + $0x4] sm:$0xf0]  ;;  %v580_v42 = vld [vmem:[%s1567_s2 + $0x10] sm:$0xff] }
  0xec   : > { %489 = vst [vmem:[#allocation2 + $0xa8] sm:$0xff] %v485_v50  ;;  %v984_v48 = vor.u32 %v1112_v41, %v983_v40  ;;  %v581_v50 = vld [vmem:[%s1567_s2 + $0x18] sm:$0xff]  ;;  %594 = vperm.xlu2 %1214, %v580_v42  }
  0xed   : > { %762 = vmatpush.bf16.msra.mxu0 %v1016_v53  ;;  %800 = vmatpush.bf16.msra.mxu2 %v1020_v54 }
  0xee   : > { %v210_v56 = vpop.permute.xlu1 %209  ;;  %v208_v57 = vpop.permute.xlu0 %207  ;;  %599 = vperm.xlu1 %1213, %v581_v50  }
  0xef   : > { %v216_v58 = vrot.slane %v210_v56, 4  ;;  %v215_v59 = vrot.slane %v208_v57, 4  ;;  %v418_v29 = vpop.permute.xlu2 %417 }
  0xf0   : > { %v422_v35 = vrot.slane %v418_v29, 4 }
  0xf1   : > { %v220_v60 = vsel %vm219_vm0, %v215_v59, %v216_v58  ;;  %v1111_v58 = vld [vmem:[%s1566_s1 + $0x4] sm:$0xf] }
  0xf2   : > { %v222_v61 = vsel %vm221_vm10, %v208_v57, %v220_v60  ;;  %v1079_v62 = vld [vmem:[#allocation2 + $0xa0] sm:$0xf]  ;;  %v1135_v63 = vld [vmem:[#allocation2 + $0xa4] sm:$0xf] }
  0xf3   : > { %227 = vst [vmem:[#allocation2 + $0x10] sm:$0xff] %v222_v61  ;;  %v1136_v0 = vld [vmem:[#allocation2 + $0xa4] sm:$0xf0]  ;;  %v1081_v1 = vld [vmem:[#allocation2 + $0xa8] sm:$0xf0] }
  0xf4   : > { %v1080_v3 = vor.u32 %v1136_v0, %v1079_v62  ;;  %v1084_v4 = vor.u32 %v1135_v63, %v1081_v1  ;;  %v985_v61 = vld [vmem:[%s1566_s1 + $0x8] sm:$0xf0] }
  0xf6   : > { %781 = vmatpush.bf16.msra.mxu1 %v1080_v3  ;;  %819 = vmatpush.bf16.msra.mxu3 %v1084_v4  ;;  %v441_v6 = vpop.permute.xlu1 %440  ;;  %v214_v7 = vpop.permute.xlu0 %213  ;;  %v988_v3 = vor.u32 %v1111_v58, %v985_v61  ;;  %v991_v4 = vld [vmem:[%s1566_s1 + $0x10] sm:$0xf] }
  0xf7   : > { %v448_v2 = vrot.slane %v441_v6, 4  ;;  %v218_v9 = vrot.slane %v214_v7, 4  ;;  %v1113_v7 = vld [vmem:[%s1566_s1 + $0x14] sm:$0xf] }
  0xf9   : > { %v452_v11 = vsel %vm219_vm0, %v448_v2, %v449_v5  ;;  %v223_v12 = vsel %vm219_vm0, %v217_v8, %v218_v9  ;;  %v1114_v5 = vld [vmem:[%s1566_s1 + $0x14] sm:$0xf0]  ;;  %v993_v8 = vld [vmem:[%s1566_s1 + $0x18] sm:$0xf0] }
  0xfa   : > { %v454_v13 = vsel %vm453_vm11, %v441_v6, %v452_v11  ;;  %v224_v14 = vsel %vm221_vm10, %v212_v39, %v223_v12  ;;  %v1007_v27 = vld [vmem:[#allocation2 + $0x10] sm:$0xf]  ;;  %v1117_v28 = vld [vmem:[#allocation2 + $0x14] sm:$0xf]  ;;  %v1000_v39 = vor.u32 %v1116_v24, %v999_v23  ;;  %v992_v6 = vor.u32 %v1114_v5, %v991_v4 }
  0xfb   : > { %459 = vst [vmem:[#allocation2 + $0x90] sm:$0xff] %v454_v13  ;;  %v996_v2 = vor.u32 %v1113_v7, %v993_v8 }
  0xfc   : > { %228 = vst [vmem:[#allocation2 + $0x18] sm:$0xff] %v224_v14 }
  0xfe   : > { %v447_v17 = vpop.permute.xlu1 %446  ;;  %v445_v18 = vpop.permute.xlu0 %444 }
  0xff   : > { %v451_v20 = vrot.slane %v447_v17, 4  ;;  %v450_v21 = vrot.slane %v445_v18, 4 }
 0x101   : > { %v455_v22 = vsel %vm219_vm0, %v450_v21, %v451_v20 }
 0x102   : > { %v456_v26 = vsel %vm453_vm11, %v445_v18, %v455_v22  ;;  %v1071_v49 = vld [vmem:[#allocation2 + $0x90] sm:$0xf]  ;;  %v1133_v54 = vld [vmem:[#allocation2 + $0x94] sm:$0xf] }
 0x103   : > { %460 = vst [vmem:[#allocation2 + $0x98] sm:$0xff] %v456_v26  ;;  %v1118_v31 = vld [vmem:[#allocation2 + $0x14] sm:$0xf0]  ;;  %v1009_v32 = vld [vmem:[#allocation2 + $0x18] sm:$0xf0] }
 0x104   : > { %v1008_v33 = vor.u32 %v1118_v31, %v1007_v27  ;;  %v1012_v34 = vor.u32 %v1117_v28, %v1009_v32 }
 0x106   : > { %763 = vmatpush.bf16.msra.mxu0 %v1008_v33  ;;  %801 = vmatpush.bf16.msra.mxu2 %v1012_v34  ;;  %v416_v37 = vpop.permute.xlu1 %415  ;;  %v414_v38 = vpop.permute.xlu0 %413 }
 0x107   : > { %v421_v44 = vrot.slane %v416_v37, 4  ;;  %v420_v45 = vrot.slane %v414_v38, 4 }
 0x109   : > { %v426_v46 = vsel %vm219_vm0, %v421_v44, %v422_v35  ;;  %v423_v47 = vsel %vm219_vm0, %v419_v43, %v420_v45 }
 0x10a   : > { %v427_v51 = vsel %vm424_vm12, %v416_v37, %v426_v46  ;;  %v425_v52 = vsel %vm424_vm12, %v412_v10, %v423_v47  ;;  %764 = vmatpush.bf16.msra.mxu0 %v1000_v39  ;;  %802 = vmatpush.bf16.msra.mxu2 %v1004_v36  ;;  %v1134_v53 = vld [vmem:[#allocation2 + $0x94] sm:$0xf0]  ;;  %v1073_v55 = vld [vmem:[#allocation2 + $0x98] sm:$0xf0] }
 0x10b   : > { %431 = vst [vmem:[#allocation2 + $0x88] sm:$0xff] %v427_v51  ;;  %v1072_v56 = vor.u32 %v1134_v53, %v1071_v49  ;;  %v1076_v57 = vor.u32 %v1133_v54, %v1073_v55 }
 0x10c   : > { %430 = vst [vmem:[#allocation2 + $0x80] sm:$0xff] %v425_v52 }
 0x10d   : > { %765 = vmatmul.bf16.vlgmr.msra.gmra.mxu0 %v984_v48  ;;  %803 = vmatmul.bf16.vlgmr.msra.gmra.mxu2 %v984_v48 }
 0x10e   : > { %782 = vmatpush.bf16.msra.mxu1 %v1072_v56  ;;  %820 = vmatpush.bf16.msra.mxu3 %v1076_v57 }
 0x112   : > { %v1132_v59 = vld [vmem:[#allocation2 + $0x84] sm:$0xf0]  ;;  %v1065_v60 = vld [vmem:[#allocation2 + $0x88] sm:$0xf0] }
 0x113   : > { %v1063_v62 = vld [vmem:[#allocation2 + $0x80] sm:$0xf]  ;;  %v1131_v63 = vld [vmem:[#allocation2 + $0x84] sm:$0xf] }
 0x114   : > { %v1064_v0 = vor.u32 %v1132_v59, %v1063_v62  ;;  %v1068_v1 = vor.u32 %v1131_v63, %v1065_v60 }
 0x116   : > { %783 = vmatpush.bf16.msra.mxu1 %v1064_v0  ;;  %821 = vmatpush.bf16.msra.mxu3 %v1068_v1 }
 0x119   : > { %1101 = vmatmul.msk.bf16.vlgmr.msra.gmra.mxu1 %vm750_vm13, %v988_v3  ;;  %1103 = vmatmul.msk.bf16.vlgmr.msra.gmra.mxu3 %vm750_vm13, %v988_v3 }
 0x11d   : > { %770 = vmatmul.bf16.gmra.mxu0 %v992_v6  ;;  %808 = vmatmul.bf16.gmra.mxu2 %v992_v6 }
 0x129   : > { %1102 = vmatmul.msk.bf16.gmra.mxu1 %vm750_vm13, %v996_v2  ;;  %1104 = vmatmul.msk.bf16.gmra.mxu3 %vm750_vm13, %v996_v2 }
 0x146   : > { %v595_v28 = vpop.permute.xlu2 %594 }
 0x14d   : > { %v585_v10 = vpop.permute.xlu0 %584  ;;  %v590_v18 = vpop.permute.xlu1 %589 }
 0x160   : > { %v600_v48 = vpop.permute.xlu1 %599 }
 0x18a   : > { %v766_v9 = vpop.f32.mrf.mxu0 }
 0x18b   : > { %v767_v12 = vadd.f32 %v766_v9, %v585_v10 }
 0x190   : > { %v804_v11 = vpop.f32.mrf.mxu2 }
 0x191   : > { %v805_v16 = vadd.f32 %v804_v11, %v585_v10 }
 0x192   : > { %v768_v13 = vpop.f32.mrf.mxu0 }
 0x193   : > { %v769_v22 = vadd.f32 %v768_v13, %v590_v18 }
 0x196   : > { %v785_v14 = vpop.f32.mrf.mxu1 }
 0x197   : > { %v786_v15 = vadd.f32 %v785_v14, %v767_v12 }
 0x198   : > { %v806_v20 = vpop.f32.mrf.mxu2 }
 0x199   : > { %v833_v17 = vsub.f32 0.0, %v786_v15  ;;  %v807_v32 = vadd.f32 %v806_v20, %v590_v18 }
 0x19a   : > { %v771_v27 = vpop.f32.mrf.mxu0 }
 0x19b   : > { %v837_v19 = vmul.f32 1.442695, %v833_v17  ;;  %v772_v34 = vadd.f32 %v771_v27, %v595_v28 }
 0x19c   : > { %v823_v21 = vpop.f32.mrf.mxu3 }
 0x19d   : > { %1215 = vpow2.f32 %v837_v19  ;;  %v824_v23 = vadd.f32 %v823_v21, %v805_v16 }
 0x19e   : > { %v787_v24 = vpop.f32.mrf.mxu1 }
 0x19f   : > { %v834_v25 = vsub.f32 0.0, %v824_v23  ;;  %v788_v26 = vadd.f32 %v787_v24, %v769_v22 }
 0x1a0   : > { %v809_v39 = vpop.f32.mrf.mxu2 }
 0x1a1   : > { %v839_v29 = vmul.f32 1.442695, %v834_v25  ;;  %v835_v30 = vsub.f32 0.0, %v788_v26  ;;  %v810_v45 = vadd.f32 %v809_v39, %v595_v28 }
 0x1a2   : > { %v773_v49 = vpop.f32.mrf.mxu0 }
 0x1a3   : > { %v1216_v31 = vpop.eup %1215  ;;  %1217 = vpow2.f32 %v839_v29  ;;  %v841_v33 = vmul.f32 1.442695, %v835_v30  ;;  %v774_v53 = vadd.f32 %v773_v49, %v600_v48 }
 0x1a4   : > { %v845_v35 = vadd.f32 1.0, %v1216_v31  ;;  %v825_v37 = vpop.f32.mrf.mxu3 }
 0x1a5   : > { %1219 = vpow2.f32 %v841_v33  ;;  %v826_v38 = vadd.f32 %v825_v37, %v807_v32 }
 0x1a6   : > { %1221 = vrcp.f32 %v845_v35  ;;  %v790_v36 = vpop.f32.mrf.mxu1 }
 0x1a7   : > { %v836_v40 = vsub.f32 0.0, %v826_v38  ;;  %v791_v41 = vadd.f32 %v790_v36, %v772_v34 }
 0x1a8   : > { %v811_v59 = vpop.f32.mrf.mxu2 }
 0x1a9   : > { %v1218_v43 = vpop.eup %1217  ;;  %v843_v44 = vmul.f32 1.442695, %v836_v40  ;;  %v853_v46 = vmax.f32 %v791_v41, 0.0  ;;  %v812_v63 = vadd.f32 %v811_v59, %v600_v48 }
 0x1aa   : > { %v846_v47 = vadd.f32 1.0, %v1218_v43 }
 0x1ab   : > { %v1220_v50 = vpop.eup %1219  ;;  %1223 = vpow2.f32 %v843_v44 }
 0x1ac   : > { %v1222_v42 = vpop.eup %1221  ;;  %1225 = vrcp.f32 %v846_v47  ;;  %v847_v51 = vadd.f32 1.0, %v1220_v50  ;;  %v828_v52 = vpop.f32.mrf.mxu3 }
 0x1ad   : > { %v857_v54 = vmul.f32 %v1222_v42, %v853_v46  ;;  %v829_v55 = vadd.f32 %v828_v52, %v810_v45 }
 0x1ae   : > { %1227 = vrcp.f32 %v847_v51  ;;  %v792_v56 = vpop.f32.mrf.mxu1 }
 0x1af   : > { %861 = vst [vmem:[%s1527_s12] sm:$0xff] %v857_v54  ;;  %v854_v57 = vmax.f32 %v829_v55, 0.0  ;;  %v793_v58 = vadd.f32 %v792_v56, %v774_v53 }
 0x1b1   : > { %v1224_v60 = vpop.eup %1223  ;;  %v855_v1 = vmax.f32 %v793_v58, 0.0 }
 0x1b2   : > { %v1226_v61 = vpop.eup %1225  ;;  %v848_v62 = vadd.f32 1.0, %v1224_v60 }
 0x1b3   : > { %v858_v0 = vmul.f32 %v1226_v61, %v854_v57 }
 0x1b4   : > { %v1228_v3 = vpop.eup %1227  ;;  %1229 = vrcp.f32 %v848_v62  ;;  %v830_v4 = vpop.f32.mrf.mxu3 }
 0x1b5   : > { %862 = vst [vmem:[%s1527_s12 + $0x8] sm:$0xff] %v858_v0  ;;  %v859_v5 = vmul.f32 %v1228_v3, %v855_v1  ;;  %v831_v6 = vadd.f32 %v830_v4, %v812_v63 }
 0x1b6   : > { %v889_v9 = vld [vmem:[%s1527_s12] sm:$0xff] (%p1366_p5) }
 0x1b7   : > { %863 = vst [vmem:[%s1527_s12 + $0x10] sm:$0xff] %v859_v5  ;;  %v856_v7 = vmax.f32 %v831_v6, 0.0 }
 0x1b8   : > { %890 = vst [vmem:[%s876_s6] sm:$0xff] (%p1366_p5), %v889_v9 }
 0x1b9   : > { %871 = sbr.rel (!%p1366_p5) target bundleno = 454 (0x1c6), region = 36 }
 0x1ba   : > { %v1230_v8 = vpop.eup %1229 }
 0x1bb   : > { %v860_v2 = vmul.f32 %v1230_v8, %v856_v7 }
 0x1bc   : > { %v891_v10 = vld [vmem:[%s1527_s12 + $0x8] sm:$0xff] (%p1366_p5) }
 0x1bd   : > { %864 = vst [vmem:[%s1527_s12 + $0x18] sm:$0xff] %v860_v2 }
 0x1be   : > { %v893_v11 = vld [vmem:[%s1527_s12 + $0x10] sm:$0xff]  ;;  %892 = vst [vmem:[%s876_s6 + $0x8] sm:$0xff] %v891_v10 }
 0x1bf   : > { %894 = vst [vmem:[%s876_s6 + $0x20] sm:$0xff] %v893_v11 }
 0x1c4   : > { %v895_v12 = vld [vmem:[%s1527_s12 + $0x18] sm:$0xff] }
 0x1c5   : > { %896 = vst [vmem:[%s876_s6 + $0x28] sm:$0xff] %v895_v12 }
 0x1c6 PF: > { %s13_s18 = sadd.s32 1, %s1285_s18   ;;  %s1570_s12 = smov %s1265_s13 }
 0x1c7   : > { %p10_p11 = scmp.ge.s32.totalorder %s13_s18, 6   ;;  %s1571_s13 = smov %s1377_s27 }
 0x1c8   : > { %s1572_s14 = smov %s1277_s16  ;;  %s1573_s15 = smov %s1281_s17 }
 0x1c9   : > { %s1574_s16 = smov %s1577_s19  ;;  %s1575_s17 = smov %s1581_s20 }
 0x1ca   :  { %12 = sbr.rel (!%p10_p11) target bundleno = 4 (0x4), region = 85 }

</bundles_post_ra>
